<compile_context>
chip_gen: v5e
topology: v5e:2x2
jax: 0.10.0
libtpu: 0.0.40
codegen_flags: <defaults>
</compile_context>

<pallas_src>
import functools

import jax
import jax.numpy as jnp
from jax.experimental import pallas as pl
from jax.experimental.pallas import tpu as pltpu


def _cosface_kernel(label_ref, emb_ref, w_ref, invw_ref, out_ref, *, s, m):
    # emb_ref: (bm, D) normalized embeddings (matmul dtype)
    # w_ref:   (D, tc) raw weight tile       (matmul dtype)
    # invw_ref:(1, tc)  1/||w_col||_2        (f32)
    # label_ref:(bm, 1) int32
    cos = jnp.dot(emb_ref[...], w_ref[...], preferred_element_type=jnp.float32)
    cos = cos * invw_ref[...]            # output-side column normalization (B*tc muls)
    cos = jnp.clip(cos, -1.0, 1.0)

    # Margin subtraction at the label column for rows with label != -1.
    label = label_ref[...]                                           # (bm, 1)
    col0 = pl.program_id(0) * cos.shape[1]                           # C-tile offset
    col = jax.lax.broadcasted_iota(jnp.int32, cos.shape, 1) + col0   # global col idx
    hit = (col == label) & (label != -1)                             # (bm, tc)
    cos = jnp.where(hit, cos - m, cos)                               # no m_hot temp

    out_ref[...] = (cos * s).astype(out_ref.dtype)


def cosface_forward(embeddings, weight, label, *, s=64.0, m=0.35,
                    tc=512, bm=128, matmul_dtype=jnp.bfloat16,
                    vmem_limit_bytes=None):
    """embeddings: (B, D), weight: (D, C), label: (B,) int32 (-1 = ignore)."""
    B, D = embeddings.shape
    Dw, C = weight.shape
    assert D == Dw

    tc = min(tc, C)
    bm = min(bm, B)
    assert C % tc == 0 and (tc % 128 == 0 or tc == C)
    assert B % bm == 0 and (bm % 8 == 0 or bm == B)

    emb32 = embeddings.astype(jnp.float32)
    w32 = weight.astype(jnp.float32)

    # Pre-normalize embeddings once (tiny) and precompute per-column inverse
    # weight norms (single fused reduction over W in XLA).
    emb_n = emb32 * jax.lax.rsqrt(jnp.sum(emb32 * emb32, axis=1, keepdims=True))
    inv_wnorm = jax.lax.rsqrt(jnp.sum(w32 * w32, axis=0, keepdims=True))  # (1, C) f32

    emb_in = emb_n.astype(matmul_dtype)
    w_in = w32.astype(matmul_dtype)      # bf16 halves the dominant HBM stream of W
    label2d = label.reshape(B, 1).astype(jnp.int32)

    kernel = functools.partial(_cosface_kernel, s=float(s), m=float(m))

    cp_kwargs = dict(dimension_semantics=("parallel", "parallel"))
    if vmem_limit_bytes is not None:
        # Raise on v5e/v6e (128 MiB VMEM) when using tc=1024-2048 with large D;
        # leave unset / default on v7x (64 MiB VMEM).
        cp_kwargs["vmem_limit_bytes"] = int(vmem_limit_bytes)

    # Grid: C tiles outer, B tiles inner -> weight tile (index depends only on
    # the outer axis) stays resident across the inner batch loop, W is streamed
    # from HBM exactly once.
    grid = (C // tc, B // bm)

    return pl.pallas_call(
        kernel,
        out_shape=jax.ShapeDtypeStruct((B, C), jnp.float32),
        grid_spec=pltpu.PrefetchScalarGridSpec(
            num_scalar_prefetch=0,
            grid=grid,
            in_specs=[
                pl.BlockSpec((bm, 1), lambda j, i: (i, 0)),    # label
                pl.BlockSpec((bm, D), lambda j, i: (i, 0)),    # normalized embeddings
                pl.BlockSpec((D, tc), lambda j, i: (0, j)),    # weight column tile
                pl.BlockSpec((1, tc), lambda j, i: (0, j)),    # 1/||w_col||
            ],
            out_specs=pl.BlockSpec((bm, tc), lambda j, i: (i, j)),
        ),
        compiler_params=pltpu.CompilerParams(**cp_kwargs),
    )(label2d, emb_in, w_in, inv_wnorm)


def _reference_f32(embeddings, weight, label, s, m):
    # Pure-JAX f32 reference matching the torch forward exactly.
    emb_n = embeddings / jnp.linalg.norm(embeddings, axis=1, keepdims=True)
    w_n = weight / jnp.linalg.norm(weight, axis=0, keepdims=True)
    cos = jnp.clip(emb_n @ w_n, -1.0, 1.0)
    col = jnp.arange(weight.shape[1])[None, :]
    hit = (col == label[:, None]) & (label[:, None] != -1)
    return jnp.where(hit, cos - m, cos) * s


def _reference_kernel_path(embeddings, weight, label, s, m, matmul_dtype):
    # Reference following the kernel's exact numeric path (bf16 matmul operands,
    # f32 accumulation, output-side column normalization).
    emb32 = embeddings.astype(jnp.float32)
    w32 = weight.astype(jnp.float32)
    emb_n = emb32 * jax.lax.rsqrt(jnp.sum(emb32 * emb32, axis=1, keepdims=True))
    inv_wnorm = jax.lax.rsqrt(jnp.sum(w32 * w32, axis=0, keepdims=True))
    a = emb_n.astype(matmul_dtype).astype(jnp.float32)
    b = w32.astype(matmul_dtype).astype(jnp.float32)
    cos = jnp.clip((a @ b) * inv_wnorm, -1.0, 1.0)
    col = jnp.arange(weight.shape[1])[None, :]
    hit = (col == label[:, None]) & (label[:, None] != -1)
    return jnp.where(hit, cos - m, cos) * s


if __name__ == "__main__":
    # Small shapes consistent with the module: batch=8, in_features=32,
    # out_features=1024 (two 512-wide column tiles so the C grid axis is real).
    B, D, C = 8, 32, 1024
    s, m = 64.0, 0.35

    key = jax.random.PRNGKey(0)
    k_emb, k_w, k_lab = jax.random.split(key, 3)

    embeddings = jax.random.normal(k_emb, (B, D), dtype=jnp.float32)
    # nn.init.normal_(kernel, std=0.01), shape (in_features, out_features)
    weight = 0.01 * jax.random.normal(k_w, (D, C), dtype=jnp.float32)

    label = jax.random.randint(k_lab, (B,), 0, C, dtype=jnp.int32)
    label = label.at[3].set(-1)  # one "ignored" sample, exercises label != -1 path

    out = cosface_forward(embeddings, weight, label, s=s, m=m)
    out = jax.block_until_ready(out)
    assert out.shape == (B, C)

    # Tight check against a reference that mirrors the kernel's bf16 matmul path.
    ref_path = _reference_kernel_path(embeddings, weight, label, s, m, jnp.bfloat16)
    assert jnp.allclose(out, ref_path, atol=1e-2, rtol=1e-3), "mismatch vs kernel-path reference"

    # Looser check against the pure-f32 torch-equivalent reference (bf16 MXU error,
    # bounded by ~D * 2^-8 * s in the worst case; unit-norm inputs keep it small).
    ref_f32 = _reference_f32(embeddings, weight, label, s, m)
    assert jnp.allclose(out, ref_f32, atol=0.5), "mismatch vs f32 reference"

    print("KERNEL_OK")
</pallas_src>

<mosaic_0001>
module attributes {stable_mosaic.version = 11 : i64} {
  func.func @_cosface_kernel(%arg0: i32, %arg1: i32, %arg2: memref<8x1xi32, #tpu.memory_space<vmem>>, %arg3: memref<8x32xbf16, #tpu.memory_space<vmem>>, %arg4: memref<32x512xbf16, #tpu.memory_space<vmem>>, %arg5: memref<1x512xf32, #tpu.memory_space<vmem>>, %arg6: memref<8x512xf32, #tpu.memory_space<vmem>>) attributes {dimension_semantics = [#tpu.dimension_semantics<parallel>, #tpu.dimension_semantics<parallel>], iteration_bounds = array<i64: 2, 1>, scalar_prefetch = 0 : i64, scratch_operands = 0 : i64, tpu.core_type = #tpu.core_type<tc>, window_params = [{transform_indices = @transform_0, window_bounds = array<i64: 8, 1>}, {transform_indices = @transform_1, window_bounds = array<i64: 8, 32>}, {transform_indices = @transform_2, window_bounds = array<i64: 32, 512>}, {transform_indices = @transform_3, window_bounds = array<i64: 1, 512>}, {transform_indices = @transform_4, window_bounds = array<i64: 8, 512>}]} {
    %c0 = arith.constant 0 : index
    %c0_0 = arith.constant 0 : index
    %0 = vector.load %arg3[%c0, %c0_0] : memref<8x32xbf16, #tpu.memory_space<vmem>>, vector<8x32xbf16>
    %c0_1 = arith.constant 0 : index
    %c0_2 = arith.constant 0 : index
    %1 = vector.load %arg4[%c0_1, %c0_2] : memref<32x512xbf16, #tpu.memory_space<vmem>>, vector<32x512xbf16>
    %cst = arith.constant dense<0.000000e+00> : vector<8x512xf32>
    %2 = tpu.matmul %0, %1, %cst {dimension_numbers = #tpu.dot_dimension_numbers<[1], [0], [0], [1], [0, 0, 1, 1], [], []>} : vector<8x32xbf16>, vector<32x512xbf16>, vector<8x512xf32> -> vector<8x512xf32>
    %c0_3 = arith.constant 0 : index
    %c0_4 = arith.constant 0 : index
    %3 = vector.load %arg5[%c0_3, %c0_4] : memref<1x512xf32, #tpu.memory_space<vmem>>, vector<1x512xf32>
    %4 = vector.broadcast %3 : vector<1x512xf32> to vector<8x512xf32>
    %5 = arith.mulf %2, %4 : vector<8x512xf32>
    %cst_5 = arith.constant -1.000000e+00 : f32
    %cst_6 = arith.constant 1.000000e+00 : f32
    %6 = vector.broadcast %cst_5 : f32 to vector<8x512xf32>
    %7 = arith.maximumf %6, %5 : vector<8x512xf32>
    %8 = vector.broadcast %cst_6 : f32 to vector<8x512xf32>
    %9 = arith.minimumf %8, %7 : vector<8x512xf32>
    %c0_7 = arith.constant 0 : index
    %c0_8 = arith.constant 0 : index
    %10 = vector.load %arg2[%c0_7, %c0_8] : memref<8x1xi32, #tpu.memory_space<vmem>>, vector<8x1xi32>
    %c512_i32 = arith.constant 512 : i32
    %11 = arith.muli %arg0, %c512_i32 : i32
    %12 = tpu.iota {dimensions = array<i32: 1>} : vector<8x512xi32>
    %13 = vector.broadcast %11 : i32 to vector<8x512xi32>
    %14 = arith.addi %12, %13 : vector<8x512xi32>
    %15 = vector.broadcast %10 : vector<8x1xi32> to vector<8x512xi32>
    %16 = arith.cmpi eq, %14, %15 : vector<8x512xi32>
    %c-1_i32 = arith.constant -1 : i32
    %17 = vector.broadcast %c-1_i32 : i32 to vector<8x1xi32>
    %18 = arith.cmpi ne, %10, %17 : vector<8x1xi32>
    %19 = vector.broadcast %18 : vector<8x1xi1> to vector<8x512xi1>
    %20 = arith.andi %16, %19 : vector<8x512xi1>
    %cst_9 = arith.constant 3.500000e-01 : f32
    %21 = vector.broadcast %cst_9 : f32 to vector<8x512xf32>
    %22 = arith.subf %9, %21 : vector<8x512xf32>
    %23 = arith.select %20, %22, %9 : vector<8x512xi1>, vector<8x512xf32>
    %cst_10 = arith.constant 6.400000e+01 : f32
    %24 = vector.broadcast %cst_10 : f32 to vector<8x512xf32>
    %25 = arith.mulf %23, %24 : vector<8x512xf32>
    %c0_11 = arith.constant 0 : index
    %c0_12 = arith.constant 0 : index
    %26 = vector.load %arg6[%c0_11, %c0_12] : memref<8x512xf32, #tpu.memory_space<vmem>>, vector<8x512xf32>
    tpu.vector_store %arg6[%c0_11, %c0_12], %25 {strides = array<i32>} : memref<8x512xf32, #tpu.memory_space<vmem>>, vector<8x512xf32>,
    return
  }
  func.func @transform_0(%arg0: i32, %arg1: i32) -> (i32, i32) {
    %c0_i32 = arith.constant 0 : i32
    %c0_i32_0 = arith.constant 0 : i32
    return %arg1, %c0_i32 : i32, i32
  }
  func.func @transform_1(%arg0: i32, %arg1: i32) -> (i32, i32) {
    %c0_i32 = arith.constant 0 : i32
    %c0_i32_0 = arith.constant 0 : i32
    return %arg1, %c0_i32 : i32, i32
  }
  func.func @transform_2(%arg0: i32, %arg1: i32) -> (i32, i32) {
    %c0_i32 = arith.constant 0 : i32
    %c0_i32_0 = arith.constant 0 : i32
    return %c0_i32, %arg0 : i32, i32
  }
  func.func @transform_3(%arg0: i32, %arg1: i32) -> (i32, i32) {
    %c0_i32 = arith.constant 0 : i32
    %c0_i32_0 = arith.constant 0 : i32
    return %c0_i32, %arg0 : i32, i32
  }
  func.func @transform_4(%arg0: i32, %arg1: i32) -> (i32, i32) {
    %c0_i32 = arith.constant 0 : i32
    return %arg1, %arg0 : i32, i32
  }
}

</mosaic_0001>

<bundles_post_ra>
// kernel: tpu_custom_call.1
= control target key start
LH: loop header
LB: loop body
LE: loop exit
PB: predicated region body
PF: predicated region fallthrough
CT: control target
= control target key end

     0   :  { %s1115_s0 = inlined_call_operand.vmem [shape: s32[8,1], index: 0, kind: input, shape index: {}]   ;;  %s1116_s1 = inlined_call_operand.hbm [shape: bf16[8,32], index: 1, kind: input, shape index: {}]   ;;  %s1117_s2 = inlined_call_operand.hbm [shape: bf16[32,1024], index: 2, kind: input, shape index: {}]   ;;  %s1118_s3 = inlined_call_operand.vmem [shape: f32[1,1024], index: 3, kind: input, shape index: {}]   ;;  %s1119_s4 = inlined_call_operand.hbm [shape: f32[8,1024], index: 4, kind: output, shape index: {}]  }
   0x1   :  { %1123 = sst [smem:[#allocation13_spill]] %s1116_s1 }
   0x2   :  { %9 = vsyncpa [#allocation3], 0 }
   0x3   :  { %10 = vsyncpa [#allocation6], 0 }
   0x4   :  { %12 = vsyncpa [#allocation6 + $0x1], 0 }
   0x5   :  { %13 = vsyncpa [#allocation4], 0 }
   0x6   :  { %15 = vsyncpa [#allocation4 + $0x1], 0  ;;  %s933_s15 = smov 0   ;;  %s935_s16 = smov 0  }
   0x7   :  { %s937_s17 = smov 0   ;;  %s939_s18 = smov 0  }
   0x8   :  { %s941_s19 = smov 0   ;;  %s943_s20 = smov 0  }
   0x9 LB: > { %1124 = sst [smem:[#allocation11_spill]] %s901_s20  ;;  %s603_s21 = sadd.s32 4294967295, %s901_s20   ;;  %s901_s20 = sphi %s943_s20, %s21_s20   ;;  %s897_s19 = sphi %s941_s19, %s1140_s19   ;;  %s893_s18 = sphi %s939_s18, %s1139_s18   ;;  %s889_s17 = sphi %s937_s17, %s1138_s17   ;;  %s885_s16 = sphi %s935_s16, %s1137_s16   ;;  %s881_s15 = sphi %s933_s15, %s1136_s15  }
   0xa   : > { %s604_s22 = sadd.s32 4294967294, %s901_s20   ;;  %s92_s23 = sadd.s32 1, %s889_s17 }
   0xb   : > { %p99_p0 = scmp.ne.s32.totalorder %s889_s17, %s885_s16  ;;  %p100_p1 = scmp.eq.s32.totalorder %s901_s20, 0 }
   0xc   : > { %p105_p2 = scmp.ne.s32.totalorder %s885_s16, %s881_s15  ;;  %p971_p3 = scmp.eq.s32.totalorder %s603_s21, 0 }
   0xd   : > { %p157_p4 = scmp.eq.s32.totalorder %s603_s21, 1  ;;  %p975_p5 = por %p100_p1, %p99_p0 }
   0xe   : > { %p163_p6 = scmp.eq.s32.totalorder %s604_s22, 1  ;;  %p981_p7 = por %p971_p3, %p105_p2 }
   0xf   : > { %p985_p8 = por %p157_p4, %p99_p0  ;;  %p605_p10 = scmp.ge.s32.totalorder %s901_s20, 1 }
  0x10   : > { %p989_p9 = por %p163_p6, %p105_p2  ;;  %p170_p11 = scmp.lt.s32.totalorder %s901_s20, 3 }
  0x11   : > { %s1131_s1 = sld [smem:[#allocation13_spill]]  ;;  %s903_s7 = smov [#allocation2]  }
  0x12   : > { %s1129_s28 = scalar_select %p989_p9, 1, 0 }
  0x13   : > { %p998_p12 = pnand %p605_p10, %p170_p11  ;;  %s193_s8 = sshll.u32 %s903_s7, 4  ;;  %s194_s8 = int_to_ptr.vmem [resolvable:$true] %s193_s8 }
  0x14   : > { %1130 = sst [smem:[#allocation12_spill]] %s1129_s28  ;;  %p608_p13 = scmp.ge.s32.totalorder %s901_s20, 2 }
  0x15   : > { %p685_p0 = pneg %p998_p12  ;;  %p698_p1 = scmp.lt.s32.totalorder %s901_s20, 2 }
  0x16   : > { %s33_s10 = sadd.s32 1, %s897_s19  ;;  %s204_s11 = sand.u32 1, %s889_s17  }
  0x17   : > { %s191_s5 = sshll.u32 %s1131_s1, 4  ;;  %p686_p2 = pnand %p685_p0, %p971_p3  ;;  %s192_s5 = int_to_ptr.hbm [resolvable:$true] %s191_s5 }
  0x18   : > { %p1010_p4 = pnand %p698_p1, %p975_p5  ;;  %p35_p6 = scmp.ge.s32.totalorder %s33_s10, 2 }
  0x19   : > { %688 = dma.hbm_to_vmem [thread:$0]  (!%p686_p2), %s192_s5, 64, %s194_s8, [#allocation3]  }
  0x1a   : > { %s1142_s10 = smov (%p35_p6, %s33_s10), 0  ;;  %s609_s12 = sshll.u32 %s204_s11, 6 }
  0x1b   : > { %s89_s13 = ssub.s32 %s897_s19, %s1142_s10  ;;  %s667_s14 = sshll.u32 %s897_s19, 4 }
  0x1c   : > { %p90_p10 = scmp.eq.s32.totalorder %s89_s13, 0  ;;  %s213_s25 = scalar_lea.hbm %s1117_s2, %s667_s14 }
  0x1d   : > { %s208_s29 = scalar_lea.vmem [#allocation5], %s609_s12  ;;  %s214_s1 = sshll.u32 %s213_s25, 4  ;;  %s215_s1 = int_to_ptr.hbm [resolvable:$true] %s214_s1 }
  0x1e   : > { %s216_s30 = sshll.u32 %s208_s29, 4  ;;  %s205_s5 = scalar_lea.sflag [#allocation6], %s204_s11  ;;  %s217_s30 = int_to_ptr.vmem [resolvable:$true] %s216_s30 }
  0x1f   : > { %s1027_s7 = scalar_select %p90_p10, %s889_s17, %s92_s23  }
  0x20   : > { %s904_s8 = smov 512   ;;  %s905_s20 = smov 256  }
  0x21   : > { %s906_s28 = smov 16   ;;  %236 = sbr.rel (%p998_p12) target bundleno = 200 (0xc8), region = 36 }
  0x22   : > { %692 = dma.hbm_to_vmem [thread:$0]  (!%p1010_p4), %s215_s1, 1024, %s217_s30, %s205_s5, %s904_s8, %s905_s20, %s906_s28  }
  0x26   : > { %868 = dma.done.wait (%p971_p3), [#allocation3], 64  }
  0x27   : > { %870 = vsyncadd (%p971_p3), [#allocation3], 4294967232  ;;  %s1038_s23 = sand.u32 1, %s885_s16  }
  0x28   : > { %s614_s11 = sshll.u32 %s1038_s23, 6  ;;  %s244_s12 = scalar_lea.sflag [#allocation6], %s1038_s23 }
  0x29   : > { %s1042_s13 = scalar_lea.vmem [#allocation5], %s614_s11 }
  0x2a   : > { %872 = dma.done.wait (%p981_p7), %s244_s12, 1024  }
  0x2b   : > { %874 = vsyncadd (%p981_p7), %s244_s12, 4294966272  ;;  %v907_v0 = vmov 0   ;;  %v635_v1 = vld [vmem:[%s1042_s13 + $0x20] sm:$0xf]  ;;  %v674_v2 = vld [vmem:[%s1042_s13 + $0x2c] sm:$0xf0]  ;;  %v422_v28 = vlaneseq }
  0x2c   : > { %754 = vset.pattern.permute.xlu0 %v907_v0  ;;  %v672_v3 = vld [vmem:[%s1042_s13 + $0x24] sm:$0xf]  ;;  %v636_v4 = vor.u32 %v674_v2, %v635_v1  ;;  %v637_v5 = vld [vmem:[%s1042_s13 + $0x30] sm:$0xf0]  ;;  %v643_v6 = vld [vmem:[%s1042_s13 + $0x28] sm:$0xf] }
  0x2d   : > { %v675_v7 = vld [vmem:[%s1042_s13 + $0x34] sm:$0xf0]  ;;  %v640_v8 = vor.u32 %v672_v3, %v637_v5  ;;  %v673_v10 = vld [vmem:[%s1042_s13 + $0x2c] sm:$0xf]  ;;  %v645_v11 = vld [vmem:[%s1042_s13 + $0x38] sm:$0xf0] }
  0x2e   : > { %v644_v9 = vor.u32 %v675_v7, %v643_v6  ;;  %v619_v12 = vld [vmem:[%s1042_s13] sm:$0xf]  ;;  %352 = vmatpush.bf16.msra.mxu0 %v636_v4  ;;  %v648_v13 = vor.u32 %v673_v10, %v645_v11  ;;  %v670_v14 = vld [vmem:[%s1042_s13 + $0xc] sm:$0xf0]  ;;  %v668_v15 = vld [vmem:[%s1042_s13 + $0x4] sm:$0xf] }
  0x2f   : > { %v621_v16 = vld [vmem:[%s1042_s13 + $0x10] sm:$0xf0]  ;;  %365 = vmatpush.bf16.msra.mxu1 %v640_v8  ;;  %v620_v17 = vor.u32 %v670_v14, %v619_v12  ;;  %v627_v19 = vld [vmem:[%s1042_s13 + $0x8] sm:$0xf]  ;;  %v671_v20 = vld [vmem:[%s1042_s13 + $0x14] sm:$0xf0] }
  0x30   : > { %378 = vmatpush.bf16.msra.mxu2 %v644_v9  ;;  %v624_v18 = vor.u32 %v668_v15, %v621_v16  ;;  %v669_v21 = vld [vmem:[%s1042_s13 + $0xc] sm:$0xf]  ;;  %391 = vmatpush.bf16.msra.mxu3 %v648_v13  ;;  %v628_v22 = vor.u32 %v671_v20, %v627_v19  ;;  %v629_v23 = vld [vmem:[%s1042_s13 + $0x18] sm:$0xf0]  ;;  %vm342_vm0 = vcmask 261120   ;;  %s616_s24 = sshll.u32 %s893_s18, 2 }
  0x31   : > { %v420_v24 = vld [vmem:[%s1115_s0] sm:$0xff]  ;;  %v632_v25 = vor.u32 %v669_v21, %v629_v23  ;;  %p287_p3 = scmp.lt.s32.totalorder %s616_s24, 7  ;;  %v423_v30 = vand.u32 127, %v422_v28  ;;  %s657_s9 = sshll.u32 %s893_s18, 9 }
  0x32   : > { %433 = vperm.xlu0 %754, %v420_v24   ;;  %353 = vmatpush.bf16.msra.mxu0 %v620_v17  ;;  %v293_v26 = vld [vmem:[#allocation2] sm:$0xf]  ;;  %vm439_vm1 = vcmp.ne.s32.totalorder %v420_v24, 4294967295  ;;  %v427_v33 = vstv %s657_s9  ;;  %s615_s14 = sshll.u32 %s1038_s23, 5  ;;  %s676_s21 = sshll.u32 %s893_s18, 5 }
  0x33   : > { %366 = vmatpush.bf16.msra.mxu1 %v624_v18  ;;  %v440_v27 = vsel %vm439_vm1, 1, %v907_v0  ;;  %s1144_s24 = smov (!%p287_p3, %s616_s24), 7  ;;  %v424_v32 = vadd.s32 128, %v423_v30  ;;  %v428_v36 = vadd.s32 %v427_v33, %v423_v30  ;;  %v425_v43 = vadd.s32 256, %v423_v30  ;;  %s280_s22 = scalar_lea.vmem [#allocation7], %s615_s14 }
  0x34   : > { %379 = vmatpush.bf16.msra.mxu2 %v628_v22  ;;  %392 = vmatpush.bf16.msra.mxu3 %v632_v25  ;;  %s289_s6 = scalar_lea.vmem %s1118_s3, %s1144_s24  ;;  %v426_v45 = vadd.s32 384, %v423_v30  ;;  %s479_s30 = scalar_lea.hbm %s1119_s4, %s676_s21 }
  0x35   : > { %649 = vmatmul.msk.bf16.vlgmr.msra.gmra.mxu0 %vm342_vm0, %v293_v26  ;;  %v398_v31 = vld [vmem:[%s289_s6] sm:$0xf]  ;;  %v429_v38 = vadd.s32 %v427_v33, %v424_v32  ;;  %v430_v51 = vadd.s32 %v427_v33, %v425_v43  ;;  %s481_s18 = sshll.u32 %s280_s22, 4  ;;  %s483_s5 = sshll.u32 %s479_s30, 4  ;;  %s482_s18 = int_to_ptr.vmem [resolvable:$true] %s481_s18  ;;  %s484_s5 = int_to_ptr.hbm [resolvable:$true] %s483_s5 }
  0x36   : > { %650 = vmatmul.msk.bf16.vlgmr.msra.gmra.mxu1 %vm342_vm0, %v293_v26  ;;  %v400_v34 = vperm.slane %v398_v31, 0  ;;  %v401_v35 = vperm.slane %v398_v31, 1  ;;  %v402_v47 = vperm.slane %v398_v31, 2  ;;  %v403_v49 = vperm.slane %v398_v31, 3  ;;  %s466_s8 = scalar_lea.sflag [#allocation4], %s1038_s23  ;;  %s829_s11 = sshra.s32 %s484_s5, 4  ;;  %s830_s11 = int_to_ptr.hbm [resolvable:$true] %s829_s11 }
  0x37   : > { %651 = vmatmul.msk.bf16.vlgmr.msra.gmra.mxu2 %vm342_vm0, %v293_v26  ;;  %652 = vmatmul.msk.bf16.vlgmr.msra.gmra.mxu3 %vm342_vm0, %v293_v26  ;;  %v431_v52 = vadd.s32 %v427_v33, %v426_v45  ;;  %s831_s12 = scalar_lea.hbm %s830_s11, 32  ;;  %s835_s20 = scalar_lea.hbm %s1119_s4, 64 }
  0x38   : > { %p832_p5 = scmp.ne.s32.totalorder %s830_s11, %s831_s12  ;;  %p836_p12 = scmp.lt.s32.totalorder %s830_s11, %s1119_s4 }
  0x39   : > { %p837_p0 = scmp.lt.s32.totalorder %s835_s20, %s831_s12 }
  0x3a   : > { %442 = vperm.xlu0 %754, %v440_v27   ;;  %p833_p7 = pnand %p832_p5, %p985_p8 }
  0x3b   : > { %p838_p1 = por %p837_p0, %p836_p12 }
  0x3c   : > { %p834_p11 = pneg %p833_p7 }
  0x3e   : > { %p839_p2 = pnand %p838_p1, %p834_p11 }
  0xa4   : > { %v434_v29 = vpop.permute.xlu0 %433 }
  0xa5   : > { %vm435_vm2 = vcmp.eq.s32.totalorder %v428_v36, %v434_v29  ;;  %vm436_vm4 = vcmp.eq.s32.totalorder %v429_v38, %v434_v29  ;;  %vm437_vm7 = vcmp.eq.s32.totalorder %v430_v51, %v434_v29  ;;  %vm438_vm8 = vcmp.eq.s32.totalorder %v431_v52, %v434_v29 }
  0xac   : > { %v443_v39 = vpop.permute.xlu0 %442 }
  0xad   : > { %vm444_vm3 = vcmp.eq.s32.totalorder %v443_v39, 1 }
  0xae   : > { %vm445_vm5 = vmand %vm435_vm2, %vm444_vm3 }
  0xaf   : > { %vm446_vm6 = vmand %vm436_vm4, %vm444_vm3 }
  0xb0   : > { %vm447_vm9 = vmand %vm437_vm7, %vm444_vm3 }
  0xb1   : > { %vm448_vm10 = vmand %vm438_vm8, %vm444_vm3 }
  0xb2   : > { %v355_v37 = vpop.f32.mrf.mxu0 }
  0xb3   : > { %v408_v40 = vmul.f32 %v400_v34, %v355_v37  ;;  %v368_v41 = vpop.f32.mrf.mxu1 }
  0xb4   : > { %v409_v42 = vmul.f32 %v401_v35, %v368_v41 }
  0xb5   : > { %v653_v44 = vclamps-f32 %v408_v40, 1.0 }
  0xb6   : > { %v654_v46 = vclamps-f32 %v409_v42, 1.0 }
  0xb7   : > { %v658_v48 = vadd.f32 -0.35, %v653_v44 }
  0xb8   : > { %v659_v50 = vadd.f32 -0.35, %v654_v46 }
  0xb9   : > { %v453_v53 = vsel %vm445_vm5, %v658_v48, %v653_v44 }
  0xba   : > { %v381_v54 = vpop.f32.mrf.mxu2  ;;  %v454_v55 = vsel %vm446_vm6, %v659_v50, %v654_v46  ;;  %v457_v56 = vmul.f32 64.0, %v453_v53  ;;  %v394_v58 = vpop.f32.mrf.mxu3 }
  0xbb   : > { %v410_v57 = vmul.f32 %v402_v47, %v381_v54  ;;  %v357_v59 = vpop.f32.mrf.mxu0  ;;  %v458_v60 = vmul.f32 64.0, %v454_v55  ;;  %v411_v61 = vmul.f32 %v403_v49, %v394_v58  ;;  %v370_v62 = vpop.f32.mrf.mxu1 }
  0xbc   : > { %461 = vst [vmem:[%s280_s22] sm:$0xff] %v457_v56 }
  0xbd   : > { %v655_v63 = vclamps-f32 %v410_v57, 1.0  ;;  %462 = vst [vmem:[%s280_s22 + $0x8] sm:$0xff] %v458_v60  ;;  %v656_v0 = vclamps-f32 %v411_v61, 1.0 }
  0xbf   : > { %v660_v1 = vadd.f32 -0.35, %v655_v63  ;;  %v661_v2 = vadd.f32 -0.35, %v656_v0 }
  0xc1   : > { %v455_v3 = vsel %vm447_vm9, %v660_v1, %v655_v63  ;;  %v456_v5 = vsel %vm448_vm10, %v661_v2, %v656_v0 }
  0xc2   : > { %v459_v4 = vmul.f32 64.0, %v455_v3  ;;  %v383_v6 = vpop.f32.mrf.mxu2  ;;  %v460_v7 = vmul.f32 64.0, %v456_v5  ;;  %v396_v8 = vpop.f32.mrf.mxu3 }
  0xc4   : > { %463 = vst [vmem:[%s280_s22 + $0x10] sm:$0xff] %v459_v4 }
  0xc5   : > { %464 = vst [vmem:[%s280_s22 + $0x18] sm:$0xff] %v460_v7 }
  0xc6   : > { %842 = shalt.err (!%p839_p2)
}
  0xc7   : > { %683 = dma.vmem_to_hbm [thread:$0]  (%p985_p8), %s482_s18, 512, %s484_s5, %s466_s8  }
  0xc8 PF: > { %s1135_s28 = sld [smem:[#allocation11_spill]]  ;;  %s495_s6 = sand.u32 1, %s881_s15  }
  0xc9   : > { %p694_p4 = pnand %p608_p13, %p989_p9  ;;  %s496_s9 = scalar_lea.sflag [#allocation4], %s495_s6 }
  0xcb   : > { %p695_p6 = pneg %p694_p4 }
  0xcd   : > { %876 = dma.done.wait (%p695_p6), %s496_s9, 512  }
  0xce   : > { %878 = vsyncadd (%p695_p6), %s496_s9, 4294966784  ;;  %s21_s20 = sadd.s32 1, %s1135_s28   ;;  %s1136_s15 = smov %s885_s16 }
  0xcf   : > { %p18_p10 = scmp.ge.s32.totalorder %s21_s20, 4   ;;  %s1137_s16 = smov %s889_s17 }
  0xd0   : > { %s1138_s17 = smov %s1027_s7  ;;  %s1139_s18 = smov %s897_s19 }
  0xd1   : > { %s1140_s19 = smov %s1142_s10  ;;  %20 = sbr.rel (!%p18_p10) target bundleno = 9 (0x9), region = 93 }
  0xd6   :  { %502 = vsyncpa [#allocation3], 1 }
  0xd7   :  { %504 = vsyncpa [#allocation3 + $0x1], 1 }
  0xd8   :  { %505 = vsyncpa [#allocation6], 1 }
  0xd9   :  { %507 = vsyncpa [#allocation6 + $0x1], 1 }
  0xda   :  { %508 = vsyncpa [#allocation4], 1 }
  0xdb   :  { %510 = vsyncpa [#allocation4 + $0x1], 1 }

</bundles_post_ra>
